<compile_context>
chip_gen: v5e
topology: v5e:2x2
jax: 0.10.0
libtpu: 0.0.40
codegen_flags: <defaults>
</compile_context>

<pallas_src>
import functools

import jax
import jax.numpy as jnp
from jax.experimental import pallas as pl
from jax.experimental.pallas import tpu as pltpu
from jax.scipy.special import erf


# -----------------------------------------------------------------------------
# Pallas kernel: fused GEMM (bf16 -> f32 acc) + bias + activation epilogue
# -----------------------------------------------------------------------------
def _mm_bias_act_kernel(a_ref, b_ref, c_ref, o_ref, *, act):
    y = jnp.dot(a_ref[...], b_ref[...], preferred_element_type=jnp.float32)
    y = y + c_ref[...]                    # per-output-channel bias (BN folded)
    if act == "relu":
        y = jnp.maximum(y, 0.0)
    o_ref[...] = y.astype(o_ref.dtype)


def _round_up(x, m):
    return (x + m - 1) // m * m


def _pick_tiles(M, N, Kp):
    """Shape-aware tile selection (MXU geometry + VMEM budget + megacore)."""
    tn = 256 if N > 128 else 128
    # double-buffered working set (bf16 A/B, <=f32 out) must stay well under
    # the smallest VMEM budget (v7x: 64 MiB physical, v5e: 16 MiB scoped dflt).
    budget = 24 * 1024 * 1024
    tm = 512
    while tm > 128 and (2 * tm * Kp * 2 + 2 * Kp * tn * 2 + 2 * tm * tn * 4) > budget:
        tm //= 2
    tm = min(tm, _round_up(M, 128))
    # v7x megacore: if the N axis has only one block, give the M axis >= 2
    # parallel steps (when M is big enough) so the 2nd TensorCore has work.
    if _round_up(N, tn) == tn and M > 256 and tm >= _round_up(M, 128):
        tm = max(128, _round_up(-(-M // 2), 128))
    return tm, tn


def matmul_bias_act(a, b, bias, *, act="none", out_dtype=jnp.bfloat16):
    """act(a @ b + bias) with a:[M,K], b:[K,N], bias:[N].

    bf16 operands, f32 MXU accumulation, f32 epilogue, `out_dtype` store.
    """
    M, K = a.shape
    _, N = b.shape
    Kp = _round_up(K, 128)
    tm, tn = _pick_tiles(M, N, Kp)
    Mp, Np = _round_up(M, tm), _round_up(N, tn)

    a_p = jnp.pad(a.astype(jnp.bfloat16), ((0, Mp - M), (0, Kp - K)))
    b_p = jnp.pad(b.astype(jnp.bfloat16), ((0, Kp - K), (0, Np - N)))
    c_p = jnp.pad(bias.reshape(1, N).astype(jnp.float32), ((0, 0), (0, Np - N)))

    # Grid: N-blocks outer, M-blocks inner -> the [Kp, tn] weight tile is
    # fetched once per outer step and stays VMEM-resident while A streams.
    out = pl.pallas_call(
        functools.partial(_mm_bias_act_kernel, act=act),
        out_shape=jax.ShapeDtypeStruct((Mp, Np), out_dtype),
        grid_spec=pltpu.PrefetchScalarGridSpec(
            num_scalar_prefetch=0,
            grid=(Np // tn, Mp // tm),
            in_specs=[
                pl.BlockSpec((tm, Kp), lambda j, i: (i, 0)),
                pl.BlockSpec((Kp, tn), lambda j, i: (0, j)),
                pl.BlockSpec((1, tn), lambda j, i: (0, j)),
            ],
            out_specs=pl.BlockSpec((tm, tn), lambda j, i: (i, j)),
        ),
        compiler_params=pltpu.CompilerParams(
            dimension_semantics=("parallel", "parallel"),
            vmem_limit_bytes=64 * 1024 * 1024,
        ),
    )(a_p, b_p, c_p)
    return out[:M, :N]


# -----------------------------------------------------------------------------
# Convolution = NHWC im2col (glue) + Pallas fused GEMM (hot path)
# -----------------------------------------------------------------------------
def _im2col_nhwc(x, kh, kw, stride, ph, pw, dil):
    n, h, w, c = x.shape
    xp = jnp.pad(x, ((0, 0), (ph, ph), (pw, pw), (0, 0)))
    ho = (h + 2 * ph - dil * (kh - 1) - 1) // stride + 1
    wo = (w + 2 * pw - dil * (kw - 1) - 1) // stride + 1
    if kh == 1 and kw == 1 and stride == 1:
        return xp.reshape(n * ho * wo, c), ho, wo
    cols = []
    for ki in range(kh):
        for kj in range(kw):
            h0, w0 = ki * dil, kj * dil
            cols.append(
                xp[:, h0:h0 + (ho - 1) * stride + 1:stride,
                       w0:w0 + (wo - 1) * stride + 1:stride, :]
            )
    col = jnp.concatenate(cols, axis=-1)            # [N, Ho, Wo, kh*kw*C]
    return col.reshape(n * ho * wo, kh * kw * c), ho, wo


@functools.partial(
    jax.jit, static_argnames=("padding", "dilation", "stride", "act", "out_dtype"))
def conv_bn_act(x, p, padding=(0, 0), dilation=1, stride=1, act="none",
                out_dtype=jnp.bfloat16):
    """x: NHWC. p['w']: PyTorch-layout (O, C, kh, kw). Returns NHWC."""
    w = p["w"]
    o, c, kh, kw = w.shape
    n = x.shape[0]
    a, ho, wo = _im2col_nhwc(x, kh, kw, stride, padding[0], padding[1], dilation)
    b = w.transpose(2, 3, 1, 0).reshape(kh * kw * c, o)
    b = b * p["scale"][None, :].astype(b.dtype)     # fold BN scale into weights
    y = matmul_bias_act(a, b, p["bias"], act=act, out_dtype=out_dtype)
    return y.reshape(n, ho, wo, o)


# -----------------------------------------------------------------------------
# Plain-JAX glue (NHWC): avg pool, bilinear upsample (PyTorch semantics)
# -----------------------------------------------------------------------------
def avg_pool2(x):
    n, h, w, c = x.shape
    return x.reshape(n, h // 2, 2, w // 2, 2, c).mean(axis=(2, 4))


def _interp_matrix(in_size, out_size, align_corners):
    dst = jnp.arange(out_size, dtype=jnp.float32)
    if align_corners:
        src = dst * (in_size - 1) / max(out_size - 1, 1)
    else:
        src = jnp.clip((dst + 0.5) * (in_size / out_size) - 0.5, 0.0, in_size - 1)
    i0 = jnp.clip(jnp.floor(src).astype(jnp.int32), 0, in_size - 1)
    i1 = jnp.minimum(i0 + 1, in_size - 1)
    w1 = src - i0.astype(jnp.float32)
    w0 = 1.0 - w1
    m = jnp.zeros((out_size, in_size), jnp.float32)
    m = m.at[jnp.arange(out_size), i0].add(w0)
    m = m.at[jnp.arange(out_size), i1].add(w1)
    return m


def bilinear_upsample(x, scale, align_corners):
    n, h, w, c = x.shape
    my = _interp_matrix(h, h * scale, align_corners)
    mx = _interp_matrix(w, w * scale, align_corners)
    y = jnp.einsum("ih,nhwc,jw->nijc", my, x.astype(jnp.float32), mx)
    return y.astype(x.dtype)


# -----------------------------------------------------------------------------
# Parameters (deterministic). BasicConv2d -> conv(no bias)+BN folded to
# (w, scale, bias); VGG convs -> scale = 1, conv bias.
# -----------------------------------------------------------------------------
class KeyGen:
    def __init__(self, key):
        self.key = key
        self.n = 0

    def __call__(self):
        k = jax.random.fold_in(self.key, self.n)
        self.n += 1
        return k


def conv_p(kg, in_c, out_c, kh, kw, bn=True):
    kw_, ks, kb = jax.random.split(kg(), 3)
    fan_in = in_c * kh * kw
    w = jax.random.normal(kw_, (out_c, in_c, kh, kw), jnp.float32) * (2.0 / fan_in) ** 0.5
    if bn:
        scale = 1.0 + 0.1 * jax.random.normal(ks, (out_c,), jnp.float32)
    else:
        scale = jnp.ones((out_c,), jnp.float32)
    bias = 0.1 * jax.random.normal(kb, (out_c,), jnp.float32)
    return {"w": w, "scale": scale, "bias": bias}


def make_vgg_a_params(kg):
    c = lambda i, o: conv_p(kg, i, o, 3, 3, bn=False)
    return {
        "conv1_1": c(3, 64), "conv1_2": c(64, 64),
        "conv2_1": c(64, 128), "conv2_2": c(128, 128),
        "conv3_1": c(128, 256), "conv3_2": c(256, 256), "conv3_3": c(256, 256),
        "conv4_1": c(256, 512), "conv4_2": c(512, 512), "conv4_3": c(512, 512),
        "conv5_1": c(512, 512), "conv5_2": c(512, 512), "conv5_3": c(512, 512),
    }


def make_vgg_d_params(kg):
    c = lambda i, o: conv_p(kg, i, o, 3, 3, bn=False)
    return {
        "conv4_1": c(256, 512), "conv4_2": c(512, 512), "conv4_3": c(512, 512),
        "conv5_1": c(512, 512), "conv5_2": c(512, 512), "conv5_3": c(512, 512),
    }


def make_rfb_params(kg, in_c, c):
    return {
        "b0_0": conv_p(kg, in_c, c, 1, 1),
        "b1_0": conv_p(kg, in_c, c, 1, 1),
        "b1_1": conv_p(kg, c, c, 1, 3),
        "b1_2": conv_p(kg, c, c, 3, 1),
        "b1_3": conv_p(kg, c, c, 3, 3),
        "b2_0": conv_p(kg, in_c, c, 1, 1),
        "b2_1": conv_p(kg, c, c, 1, 5),
        "b2_2": conv_p(kg, c, c, 5, 1),
        "b2_3": conv_p(kg, c, c, 3, 3),
        "b3_0": conv_p(kg, in_c, c, 1, 1),
        "b3_1": conv_p(kg, c, c, 1, 7),
        "b3_2": conv_p(kg, c, c, 7, 1),
        "b3_3": conv_p(kg, c, c, 3, 3),
        "cat": conv_p(kg, 4 * c, c, 3, 3),
        "res": conv_p(kg, in_c, c, 1, 1),
    }


def make_agg_params(kg, c):
    return {
        "up1": conv_p(kg, c, c, 3, 3),
        "up2": conv_p(kg, c, c, 3, 3),
        "up3": conv_p(kg, c, c, 3, 3),
        "up4": conv_p(kg, c, c, 3, 3),
        "up5": conv_p(kg, 2 * c, 2 * c, 3, 3),
        "cat2": conv_p(kg, 2 * c, 2 * c, 3, 3),
        "cat3": conv_p(kg, 3 * c, 3 * c, 3, 3),
        "conv4": conv_p(kg, 3 * c, 3 * c, 3, 3),
        "conv5": conv_p(kg, 3 * c, 1, 1, 1, bn=False),   # plain conv + bias
    }


def make_gaussian_kernel(kernlen=31, nsig=4):
    interval = (2.0 * nsig + 1.0) / kernlen
    xs = jnp.linspace(-nsig - interval / 2.0, nsig + interval / 2.0, kernlen + 1)
    cdf = 0.5 * (1.0 + erf(xs / jnp.sqrt(2.0)))
    k1 = jnp.diff(cdf)
    kr = jnp.sqrt(jnp.outer(k1, k1))
    k = kr / jnp.sum(kr)
    return k.reshape(1, 1, kernlen, kernlen).astype(jnp.float32)


# -----------------------------------------------------------------------------
# Module forwards (NHWC internally)
# -----------------------------------------------------------------------------
def vgg_a_forward(x, p):
    r = lambda t, name: conv_bn_act(t, p[name], padding=(1, 1), act="relu")
    x = r(x, "conv1_1"); x = r(x, "conv1_2")
    x = avg_pool2(x)
    x = r(x, "conv2_1"); x = r(x, "conv2_2")
    x = avg_pool2(x)
    x = r(x, "conv3_1"); x = r(x, "conv3_2"); x = r(x, "conv3_3")
    x3 = x
    x = avg_pool2(x3)
    x = r(x, "conv4_1"); x = r(x, "conv4_2"); x = r(x, "conv4_3")
    x4 = x
    x = avg_pool2(x4)
    x = r(x, "conv5_1"); x = r(x, "conv5_2"); x = r(x, "conv5_3")
    return x3, x4, x


def vgg_d_forward(x, p):
    r = lambda t, name: conv_bn_act(t, p[name], padding=(1, 1), act="relu")
    x = avg_pool2(x)
    x = r(x, "conv4_1"); x = r(x, "conv4_2"); x = r(x, "conv4_3")
    x4 = x
    x = avg_pool2(x4)
    x = r(x, "conv5_1"); x = r(x, "conv5_2"); x = r(x, "conv5_3")
    return x4, x


def _fuse_1x1(ps):
    return {"w": jnp.concatenate([q["w"] for q in ps], axis=0),
            "scale": jnp.concatenate([q["scale"] for q in ps], axis=0),
            "bias": jnp.concatenate([q["bias"] for q in ps], axis=0)}


def rfb_forward(x, p, c):
    # Fuse the five 1x1 entry convs (branch0..3 entries + conv_res) that share
    # the same input into ONE GEMM (N = 5*c) -> no 32->128 lane padding x5.
    fused = _fuse_1x1([p["b0_0"], p["b1_0"], p["b2_0"], p["b3_0"], p["res"]])
    y = conv_bn_act(x, fused, padding=(0, 0), act="none")
    x0 = y[..., 0 * c:1 * c]
    x1 = y[..., 1 * c:2 * c]
    x2 = y[..., 2 * c:3 * c]
    x3 = y[..., 3 * c:4 * c]
    x_res = y[..., 4 * c:5 * c]
    x1 = conv_bn_act(x1, p["b1_1"], padding=(0, 1))
    x1 = conv_bn_act(x1, p["b1_2"], padding=(1, 0))
    x1 = conv_bn_act(x1, p["b1_3"], padding=(3, 3), dilation=3)
    x2 = conv_bn_act(x2, p["b2_1"], padding=(0, 2))
    x2 = conv_bn_act(x2, p["b2_2"], padding=(2, 0))
    x2 = conv_bn_act(x2, p["b2_3"], padding=(5, 5), dilation=5)
    x3 = conv_bn_act(x3, p["b3_1"], padding=(0, 3))
    x3 = conv_bn_act(x3, p["b3_2"], padding=(3, 0))
    x3 = conv_bn_act(x3, p["b3_3"], padding=(7, 7), dilation=7)
    x_cat = conv_bn_act(jnp.concatenate([x0, x1, x2, x3], axis=-1),
                        p["cat"], padding=(1, 1))
    return jnp.maximum(x_cat + x_res, 0.0).astype(x_cat.dtype)


def aggregation_forward(x1, x2, x3, p):
    up = lambda t: bilinear_upsample(t, 2, align_corners=True)
    c3 = lambda t, q: conv_bn_act(t, q, padding=(1, 1), act="none")
    x1_1 = x1
    x2_1 = c3(up(x1), p["up1"]) * x2
    x3_1 = c3(up(up(x1)), p["up2"]) * c3(up(x2), p["up3"]) * x3
    x2_2 = jnp.concatenate([x2_1, c3(up(x1_1), p["up4"])], axis=-1)
    x2_2 = c3(x2_2, p["cat2"])
    x3_2 = jnp.concatenate([x3_1, c3(up(x2_2), p["up5"])], axis=-1)
    x3_2 = c3(x3_2, p["cat3"])
    x = c3(x3_2, p["conv4"])
    # conv5: plain 1x1 conv with bias, no BN / activation; keep f32 output.
    return conv_bn_act(x, p["conv5"], padding=(0, 0), act="none",
                       out_dtype=jnp.float32)


def ha_forward(att_sig, x, gk):
    """Holistic attention: gaussian blur + min-max norm + elementwise max."""
    p = {"w": gk, "scale": jnp.ones((1,), jnp.float32),
         "bias": jnp.zeros((1,), jnp.float32)}
    soft = conv_bn_act(att_sig, p, padding=(15, 15), act="none",
                       out_dtype=jnp.float32)
    mx = jnp.max(soft, axis=(1, 2, 3), keepdims=True)
    mn = jnp.min(soft, axis=(1, 2, 3), keepdims=True)
    soft = (soft - mn) / (mx - mn + 1e-8)
    w = jnp.maximum(soft, att_sig.astype(jnp.float32))
    return (x.astype(jnp.float32) * w).astype(x.dtype)


def cpd_forward(x_nchw, params, channel=32):
    x = jnp.transpose(x_nchw, (0, 2, 3, 1)).astype(jnp.bfloat16)   # NHWC
    x3, x4_1, x5_1 = vgg_a_forward(x, params["vgg_a"])
    x3_1 = rfb_forward(x3, params["rfb3_1"], channel)
    x4_1r = rfb_forward(x4_1, params["rfb4_1"], channel)
    x5_1r = rfb_forward(x5_1, params["rfb5_1"], channel)
    attention = aggregation_forward(x5_1r, x4_1r, x3_1, params["agg1"])
    att_sig = jax.nn.sigmoid(attention.astype(jnp.float32))
    x3_2 = ha_forward(att_sig, x3, params["gaussian"])
    x4_2, x5_2 = vgg_d_forward(x3_2, params["vgg_d"])
    x3_2r = rfb_forward(x3_2, params["rfb3_2"], channel)
    x4_2r = rfb_forward(x4_2, params["rfb4_2"], channel)
    x5_2r = rfb_forward(x5_2, params["rfb5_2"], channel)
    detection = aggregation_forward(x5_2r, x4_2r, x3_2r, params["agg2"])
    att_up = bilinear_upsample(attention.astype(jnp.float32), 4, align_corners=False)
    det_up = bilinear_upsample(detection.astype(jnp.float32), 4, align_corners=False)
    return (jnp.transpose(att_up, (0, 3, 1, 2)),
            jnp.transpose(det_up, (0, 3, 1, 2)))


# -----------------------------------------------------------------------------
if __name__ == "__main__":
    channel = 32
    kg = KeyGen(jax.random.PRNGKey(0))
    params = {
        "vgg_a": make_vgg_a_params(kg),
        "vgg_d": make_vgg_d_params(kg),
        "rfb3_1": make_rfb_params(kg, 256, channel),
        "rfb4_1": make_rfb_params(kg, 512, channel),
        "rfb5_1": make_rfb_params(kg, 512, channel),
        "agg1": make_agg_params(kg, channel),
        "rfb3_2": make_rfb_params(kg, 256, channel),
        "rfb4_2": make_rfb_params(kg, 512, channel),
        "rfb5_2": make_rfb_params(kg, 512, channel),
        "agg2": make_agg_params(kg, channel),
        "gaussian": make_gaussian_kernel(31, 4),
    }

    x = jax.random.normal(jax.random.PRNGKey(0), (2, 3, 64, 64), jnp.float32)
    att, det = cpd_forward(x, params, channel)
    att = jax.block_until_ready(att)
    det = jax.block_until_ready(det)
    assert att.shape == (2, 1, 64, 64), att.shape
    assert det.shape == (2, 1, 64, 64), det.shape
    assert bool(jnp.all(jnp.isfinite(att))) and bool(jnp.all(jnp.isfinite(det)))
    print("KERNEL_OK")
</pallas_src>

<mosaic_0001>
module attributes {stable_mosaic.version = 11 : i64} {
  func.func @_mm_bias_act_kernel(%arg0: i32, %arg1: i32, %arg2: memref<512x128xbf16, #tpu.memory_space<vmem>>, %arg3: memref<128x128xbf16, #tpu.memory_space<vmem>>, %arg4: memref<1x128xf32, #tpu.memory_space<vmem>>, %arg5: memref<512x128xbf16, #tpu.memory_space<vmem>>) attributes {dimension_semantics = [#tpu.dimension_semantics<parallel>, #tpu.dimension_semantics<parallel>], iteration_bounds = array<i64: 1, 16>, scalar_prefetch = 0 : i64, scratch_operands = 0 : i64, tpu.core_type = #tpu.core_type<tc>, window_params = [{transform_indices = @transform_0, window_bounds = array<i64: 512, 128>}, {transform_indices = @transform_1, window_bounds = array<i64: 128, 128>}, {transform_indices = @transform_2, window_bounds = array<i64: 1, 128>}, {transform_indices = @transform_3, window_bounds = array<i64: 512, 128>}]} {
    %c0 = arith.constant 0 : index
    %c0_0 = arith.constant 0 : index
    %0 = vector.load %arg2[%c0, %c0_0] : memref<512x128xbf16, #tpu.memory_space<vmem>>, vector<512x128xbf16>
    %c0_1 = arith.constant 0 : index
    %c0_2 = arith.constant 0 : index
    %1 = vector.load %arg3[%c0_1, %c0_2] : memref<128x128xbf16, #tpu.memory_space<vmem>>, vector<128x128xbf16>
    %cst = arith.constant dense<0.000000e+00> : vector<512x128xf32>
    %2 = tpu.matmul %0, %1, %cst {dimension_numbers = #tpu.dot_dimension_numbers<[1], [0], [0], [1], [0, 0, 1, 1], [], []>} : vector<512x128xbf16>, vector<128x128xbf16>, vector<512x128xf32> -> vector<512x128xf32>
    %c0_3 = arith.constant 0 : index
    %c0_4 = arith.constant 0 : index
    %3 = vector.load %arg4[%c0_3, %c0_4] : memref<1x128xf32, #tpu.memory_space<vmem>>, vector<1x128xf32>
    %4 = vector.broadcast %3 : vector<1x128xf32> to vector<512x128xf32>
    %5 = arith.addf %2, %4 : vector<512x128xf32>
    %cst_5 = arith.constant 0.000000e+00 : f32
    %6 = vector.broadcast %cst_5 : f32 to vector<512x128xf32>
    %7 = arith.maximumf %5, %6 : vector<512x128xf32>
    %8 = arith.truncf %7 : vector<512x128xf32> to vector<512x128xbf16>
    %c0_6 = arith.constant 0 : index
    %c0_7 = arith.constant 0 : index
    %9 = vector.load %arg5[%c0_6, %c0_7] : memref<512x128xbf16, #tpu.memory_space<vmem>>, vector<512x128xbf16>
    tpu.vector_store %arg5[%c0_6, %c0_7], %8 {strides = array<i32>} : memref<512x128xbf16, #tpu.memory_space<vmem>>, vector<512x128xbf16>,
    return
  }
  func.func @transform_0(%arg0: i32, %arg1: i32) -> (i32, i32) {
    %c0_i32 = arith.constant 0 : i32
    %c0_i32_0 = arith.constant 0 : i32
    return %arg1, %c0_i32 : i32, i32
  }
  func.func @transform_1(%arg0: i32, %arg1: i32) -> (i32, i32) {
    %c0_i32 = arith.constant 0 : i32
    %c0_i32_0 = arith.constant 0 : i32
    return %c0_i32, %arg0 : i32, i32
  }
  func.func @transform_2(%arg0: i32, %arg1: i32) -> (i32, i32) {
    %c0_i32 = arith.constant 0 : i32
    %c0_i32_0 = arith.constant 0 : i32
    return %c0_i32, %arg0 : i32, i32
  }
  func.func @transform_3(%arg0: i32, %arg1: i32) -> (i32, i32) {
    %c0_i32 = arith.constant 0 : i32
    return %arg1, %arg0 : i32, i32
  }
}

</mosaic_0001>

<bundles_post_ra>
// kernel: conv_bn_act.1
= control target key start
LH: loop header
LB: loop body
LE: loop exit
PB: predicated region body
PF: predicated region fallthrough
CT: control target
= control target key end

     0   :  { %8 = vsyncpa [#allocation3], 0  ;;  %s1871_s0 = inlined_call_operand.vmem [shape: bf16[8192,128], index: 0, kind: input, shape index: {}]   ;;  %s1872_s1 = inlined_call_operand.vmem [shape: bf16[128,128], index: 1, kind: input, shape index: {}]   ;;  %s1873_s2 = inlined_call_operand.vmem [shape: f32[1,128], index: 2, kind: input, shape index: {}]   ;;  %s1874_s3 = inlined_call_operand.hbm [shape: bf16[8192,128], index: 3, kind: output, shape index: {}]  }
   0x1   :  { %10 = vsyncpa [#allocation3 + $0x1], 0  ;;  %s1609_s12 = smov 0   ;;  %s1611_s13 = smov 0  }
   0x2   :  { %s1613_s14 = smov 0   ;;  %s1615_s15 = smov 0  }
   0x3   :  { %s1617_s16 = smov 0   ;;  %s1619_s17 = smov 0  }
   0x4 LB: > { %s1018_s18 = sadd.s32 4294967295, %s1585_s17   ;;  %s1019_s19 = sadd.s32 4294967294, %s1585_s17   ;;  %s1585_s17 = sphi %s1619_s17, %s16_s17   ;;  %s1581_s16 = sphi %s1617_s16, %s1881_s16   ;;  %s1577_s15 = sphi %s1615_s15, %s1880_s15   ;;  %s1573_s14 = sphi %s1613_s14, %s1879_s14   ;;  %s1569_s13 = sphi %s1611_s13, %s1878_s13   ;;  %s1565_s12 = sphi %s1609_s12, %s1877_s12  }
   0x5   : > { %s25_s20 = sadd.s32 1, %s1581_s16  ;;  %s115_s21 = sadd.s32 1, %s1573_s14 }
   0x6   : > { %p26_p0 = scmp.ge.s32.totalorder %s25_s20, 16  ;;  %p125_p1 = scmp.ne.s32.totalorder %s1573_s14, %s1569_s13 }
   0x7   : > { %p126_p2 = scmp.eq.s32.totalorder %s1018_s18, 15  ;;  %p131_p3 = scmp.ne.s32.totalorder %s1569_s13, %s1565_s12 }
   0x8   : > { %s1883_s20 = smov (%p26_p0, %s25_s20), 0  ;;  %p132_p5 = scmp.eq.s32.totalorder %s1019_s19, 15 }
   0x9   : > { %p1649_p4 = por %p126_p2, %p125_p1  ;;  %s110_s23 = ssub.s32 %s1581_s16, %s1883_s20 }
   0xa   : > { %p1024_p6 = scmp.ge.s32.totalorder %s1585_s17, 1  ;;  %p113_p7 = scmp.eq.s32.totalorder %s110_s23, 0 }
   0xb   : > { %p1656_p8 = por %p132_p5, %p131_p3  ;;  %p172_p9 = scmp.lt.s32.totalorder %s1585_s17, 17 }
   0xc   : > { %s1662_s25 = scalar_select %p113_p7, %s1573_s14, %s115_s21  }
   0xd   : > { %p173_p10 = pnand %p1024_p6, %p172_p9 }
   0xe   : > { %s1026_s7 = sshll.u32 (!%p173_p10), %s1577_s15, 6  ;;  %s200_s5 = sand.u32 (!%p173_p10), 1, %s1569_s13  }
   0xf   : > { %176 = sbr.rel (%p173_p10) target bundleno = 316 (0x13c), region = 32  ;;  %p204_p11 = scmp.lt.s32.totalorder (!%p173_p10), %s1026_s7, 1023 }
  0x10   : > { %s1025_s6 = sshll.u32 (!%p173_p10), %s200_s5, 8  ;;  %s1233_s8 = sshll.u32 (!%p173_p10), %s1577_s15, 8 }
  0x11   : > { %s915_s11 = scalar_lea.hbm (!%p173_p10), %s1874_s3, %s1233_s8  ;;  %s903_s19 = scalar_lea.sflag (!%p173_p10), [#allocation3], %s200_s5 }
  0x12   : > { %s918_s18 = sshll.u32 (!%p173_p10), %s915_s11, 4  ;;  %s1527_s28 = scalar_lea.hbm (!%p173_p10), %s1874_s3, 4096  ;;  %s919_s18 = int_to_ptr.hbm [resolvable:$true] %s918_s18 }
  0x14   : > { %v1232_v0 = vld [vmem:[%s1872_s1 + $0x38] sm:$0xff]  ;;  %v1231_v1 = vld [vmem:[%s1872_s1 + $0x30] sm:$0xff]  ;;  %v1230_v2 = vld [vmem:[%s1872_s1 + $0x28] sm:$0xff]  ;;  %s1885_s7 = smov (!%p204_p11, %s1026_s7), 1023 }
  0x15   : > { %541 = vmatpush.bf16.msra.mxu0 %v1232_v0  ;;  %1425 = vmatpush.bf16.msra.mxu1 %v1232_v0  ;;  %v1229_v3 = vld [vmem:[%s1872_s1 + $0x20] sm:$0xff]  ;;  %v1228_v4 = vld [vmem:[%s1872_s1 + $0x18] sm:$0xff]  ;;  %v1227_v5 = vld [vmem:[%s1872_s1 + $0x10] sm:$0xff]  ;;  %s1027_s21 = sshll.u32 %s1885_s7, 2  ;;  %s1740_s7 = scalar_lea.vmem [#allocation2], %s1025_s6 }
  0x16   : > { %1426 = vmatpush.bf16.msra.mxu2 %v1232_v0  ;;  %1427 = vmatpush.bf16.msra.mxu3 %v1232_v0  ;;  %v1226_v6 = vld [vmem:[%s1872_s1 + $0x8] sm:$0xff]  ;;  %v1225_v7 = vld [vmem:[%s1872_s1] sm:$0xff]  ;;  %s1692_s29 = scalar_lea.vmem %s1871_s0, %s1027_s21  ;;  %s916_s15 = sshll.u32 %s1740_s7, 4  ;;  %s917_s15 = int_to_ptr.vmem [resolvable:$true] %s916_s15 }
  0x17   : > { %v1193_v8 = vld [vmem:[%s1692_s29] sm:$0xff]  ;;  %v1194_v12 = vld [vmem:[%s1692_s29 + $0x8] sm:$0xff]  ;;  %v1195_v16 = vld [vmem:[%s1692_s29 + $0x10] sm:$0xff]  ;;  %s1521_s21 = sshra.s32 %s919_s18, 4  ;;  %s1522_s21 = int_to_ptr.hbm [resolvable:$true] %s1521_s21 }
  0x18   : > { %v1201_v9 = vld [vmem:[%s1692_s29 + $0x40] sm:$0xff]  ;;  %v1202_v13 = vld [vmem:[%s1692_s29 + $0x48] sm:$0xff]  ;;  %v1203_v17 = vld [vmem:[%s1692_s29 + $0x50] sm:$0xff]  ;;  %s1523_s23 = scalar_lea.hbm %s1522_s21, 256  ;;  %p1528_p1 = scmp.lt.s32.totalorder %s1522_s21, %s1874_s3 }
  0x19   : > { %542 = vmatpush.bf16.msra.mxu0 %v1231_v1  ;;  %1428 = vmatpush.bf16.msra.mxu1 %v1231_v1  ;;  %v1209_v10 = vld [vmem:[%s1692_s29 + $0x80] sm:$0xff]  ;;  %v1210_v14 = vld [vmem:[%s1692_s29 + $0x88] sm:$0xff]  ;;  %v1211_v18 = vld [vmem:[%s1692_s29 + $0x90] sm:$0xff]  ;;  %p1524_p12 = scmp.ne.s32.totalorder %s1522_s21, %s1523_s23  ;;  %p1529_p2 = scmp.lt.s32.totalorder %s1527_s28, %s1523_s23 }
  0x1a   : > { %1429 = vmatpush.bf16.msra.mxu2 %v1231_v1  ;;  %1430 = vmatpush.bf16.msra.mxu3 %v1231_v1  ;;  %v1217_v11 = vld [vmem:[%s1692_s29 + $0xc0] sm:$0xff]  ;;  %v1218_v15 = vld [vmem:[%s1692_s29 + $0xc8] sm:$0xff]  ;;  %v1219_v19 = vld [vmem:[%s1692_s29 + $0xd0] sm:$0xff] }
  0x1b   : > { %v1196_v20 = vld [vmem:[%s1692_s29 + $0x18] sm:$0xff]  ;;  %v1197_v24 = vld [vmem:[%s1692_s29 + $0x20] sm:$0xff]  ;;  %v1198_v28 = vld [vmem:[%s1692_s29 + $0x28] sm:$0xff]  ;;  %p1525_p13 = pnand %p1524_p12, %p1649_p4  ;;  %p1530_p3 = por %p1529_p2, %p1528_p1 }
  0x1c   : > { %v1204_v21 = vld [vmem:[%s1692_s29 + $0x58] sm:$0xff]  ;;  %v1205_v25 = vld [vmem:[%s1692_s29 + $0x60] sm:$0xff]  ;;  %v1206_v29 = vld [vmem:[%s1692_s29 + $0x68] sm:$0xff] }
  0x1d   : > { %543 = vmatpush.bf16.msra.mxu0 %v1230_v2  ;;  %1431 = vmatpush.bf16.msra.mxu1 %v1230_v2  ;;  %v1212_v22 = vld [vmem:[%s1692_s29 + $0x98] sm:$0xff]  ;;  %v1213_v26 = vld [vmem:[%s1692_s29 + $0xa0] sm:$0xff]  ;;  %v1214_v30 = vld [vmem:[%s1692_s29 + $0xa8] sm:$0xff]  ;;  %p1526_p0 = pneg %p1525_p13 }
  0x1e   : > { %1432 = vmatpush.bf16.msra.mxu2 %v1230_v2  ;;  %1433 = vmatpush.bf16.msra.mxu3 %v1230_v2  ;;  %v1220_v23 = vld [vmem:[%s1692_s29 + $0xd8] sm:$0xff]  ;;  %v1221_v27 = vld [vmem:[%s1692_s29 + $0xe0] sm:$0xff]  ;;  %v1222_v31 = vld [vmem:[%s1692_s29 + $0xe8] sm:$0xff] }
  0x1f   : > { %v1199_v32 = vld [vmem:[%s1692_s29 + $0x30] sm:$0xff]  ;;  %v1200_v36 = vld [vmem:[%s1692_s29 + $0x38] sm:$0xff]  ;;  %v1729_v42 = vld [vmem:[%s1873_s2] ss:$0 sm:$0xff]  ;;  %p1531_p5 = pnand %p1530_p3, %p1526_p0 }
  0x20   : > { %v1207_v33 = vld [vmem:[%s1692_s29 + $0x70] sm:$0xff]  ;;  %v1208_v37 = vld [vmem:[%s1692_s29 + $0x78] sm:$0xff] }
  0x21   : > { %544 = vmatpush.bf16.msra.mxu0 %v1229_v3  ;;  %1434 = vmatpush.bf16.msra.mxu1 %v1229_v3  ;;  %v1215_v34 = vld [vmem:[%s1692_s29 + $0xb0] sm:$0xff]  ;;  %v1216_v38 = vld [vmem:[%s1692_s29 + $0xb8] sm:$0xff] }
  0x22   : > { %1435 = vmatpush.bf16.msra.mxu2 %v1229_v3  ;;  %1436 = vmatpush.bf16.msra.mxu3 %v1229_v3  ;;  %v1223_v35 = vld [vmem:[%s1692_s29 + $0xf0] sm:$0xff]  ;;  %v1224_v39 = vld [vmem:[%s1692_s29 + $0xf8] sm:$0xff] }
  0x25   : > { %545 = vmatpush.bf16.msra.mxu0 %v1228_v4  ;;  %1437 = vmatpush.bf16.msra.mxu1 %v1228_v4 }
  0x26   : > { %1438 = vmatpush.bf16.msra.mxu2 %v1228_v4  ;;  %1439 = vmatpush.bf16.msra.mxu3 %v1228_v4 }
  0x29   : > { %546 = vmatpush.bf16.msra.mxu0 %v1227_v5  ;;  %1440 = vmatpush.bf16.msra.mxu1 %v1227_v5 }
  0x2a   : > { %1441 = vmatpush.bf16.msra.mxu2 %v1227_v5  ;;  %1442 = vmatpush.bf16.msra.mxu3 %v1227_v5 }
  0x2d   : > { %547 = vmatpush.bf16.msra.mxu0 %v1226_v6  ;;  %1443 = vmatpush.bf16.msra.mxu1 %v1226_v6 }
  0x2e   : > { %1444 = vmatpush.bf16.msra.mxu2 %v1226_v6  ;;  %1445 = vmatpush.bf16.msra.mxu3 %v1226_v6 }
  0x31   : > { %548 = vmatpush.bf16.msra.mxu0 %v1225_v7  ;;  %1446 = vmatpush.bf16.msra.mxu1 %v1225_v7 }
  0x32   : > { %1447 = vmatpush.bf16.msra.mxu2 %v1225_v7  ;;  %1448 = vmatpush.bf16.msra.mxu3 %v1225_v7 }
  0x34   : > { %549 = vmatmul.bf16.vlgmr.msra.gmra.mxu0 %v1193_v8  ;;  %589 = vmatmul.bf16.vlgmr.msra.gmra.mxu1 %v1201_v9 }
  0x35   : > { %629 = vmatmul.bf16.vlgmr.msra.gmra.mxu2 %v1209_v10  ;;  %669 = vmatmul.bf16.vlgmr.msra.gmra.mxu3 %v1217_v11 }
  0x44   : > { %554 = vmatmul.bf16.gmra.mxu0 %v1194_v12  ;;  %594 = vmatmul.bf16.gmra.mxu1 %v1202_v13 }
  0x45   : > { %634 = vmatmul.bf16.gmra.mxu2 %v1210_v14  ;;  %674 = vmatmul.bf16.gmra.mxu3 %v1218_v15 }
  0x54   : > { %559 = vmatmul.bf16.gmra.mxu0 %v1195_v16  ;;  %599 = vmatmul.bf16.gmra.mxu1 %v1203_v17 }
  0x55   : > { %639 = vmatmul.bf16.gmra.mxu2 %v1211_v18  ;;  %679 = vmatmul.bf16.gmra.mxu3 %v1219_v19 }
  0x64   : > { %564 = vmatmul.bf16.gmra.mxu0 %v1196_v20  ;;  %604 = vmatmul.bf16.gmra.mxu1 %v1204_v21 }
  0x65   : > { %644 = vmatmul.bf16.gmra.mxu2 %v1212_v22  ;;  %684 = vmatmul.bf16.gmra.mxu3 %v1220_v23 }
  0x74   : > { %569 = vmatmul.bf16.gmra.mxu0 %v1197_v24  ;;  %609 = vmatmul.bf16.gmra.mxu1 %v1205_v25 }
  0x75   : > { %649 = vmatmul.bf16.gmra.mxu2 %v1213_v26  ;;  %689 = vmatmul.bf16.gmra.mxu3 %v1221_v27 }
  0x84   : > { %574 = vmatmul.bf16.gmra.mxu0 %v1198_v28  ;;  %614 = vmatmul.bf16.gmra.mxu1 %v1206_v29 }
  0x85   : > { %654 = vmatmul.bf16.gmra.mxu2 %v1214_v30  ;;  %694 = vmatmul.bf16.gmra.mxu3 %v1222_v31 }
  0x94   : > { %579 = vmatmul.bf16.gmra.mxu0 %v1199_v32  ;;  %619 = vmatmul.bf16.gmra.mxu1 %v1207_v33 }
  0x95   : > { %659 = vmatmul.bf16.gmra.mxu2 %v1215_v34  ;;  %699 = vmatmul.bf16.gmra.mxu3 %v1223_v35 }
  0xa4   : > { %584 = vmatmul.bf16.gmra.mxu0 %v1200_v36  ;;  %624 = vmatmul.bf16.gmra.mxu1 %v1208_v37 }
  0xa5   : > { %664 = vmatmul.bf16.gmra.mxu2 %v1216_v38  ;;  %704 = vmatmul.bf16.gmra.mxu3 %v1224_v39 }
  0xb1   : > { %v550_v40 = vpop.f32.mrf.mxu0  ;;  %v590_v41 = vpop.f32.mrf.mxu1 }
  0xb2   : > { %v551_v43 = vadd.f32 %v1729_v42, %v550_v40  ;;  %v591_v44 = vadd.f32 %v1729_v42, %v590_v41 }
  0xb4   : > { %v710_v51 = vmax.f32 %v551_v43, 0.0  ;;  %v726_v52 = vmax.f32 %v591_v44, 0.0 }
  0xb8   : > { %v630_v45 = vpop.f32.mrf.mxu2  ;;  %v670_v46 = vpop.f32.mrf.mxu3 }
  0xb9   : > { %v552_v47 = vpop.f32.mrf.mxu0  ;;  %v592_v48 = vpop.f32.mrf.mxu1  ;;  %v631_v57 = vadd.f32 %v1729_v42, %v630_v45  ;;  %v671_v58 = vadd.f32 %v1729_v42, %v670_v46 }
  0xba   : > { %v553_v49 = vadd.f32 %v1729_v42, %v552_v47  ;;  %v593_v50 = vadd.f32 %v1729_v42, %v592_v48 }
  0xbb   : > { %v742_v1 = vmax.f32 %v631_v57, 0.0  ;;  %v758_v2 = vmax.f32 %v671_v58, 0.0 }
  0xbc   : > { %v711_v53 = vmax.f32 %v553_v49, 0.0  ;;  %v727_v54 = vmax.f32 %v593_v50, 0.0 }
  0xbe   : > { %v1237_v55 = vpack.c.bf16 %v711_v53, %v710_v51  ;;  %v1277_v56 = vpack.c.bf16 %v727_v54, %v726_v52 }
  0xc0   : > { %1238 = vst [vmem:[%s1740_s7] sm:$0xff] %v1237_v55   ;;  %v632_v59 = vpop.f32.mrf.mxu2  ;;  %v672_v60 = vpop.f32.mrf.mxu3 }
  0xc1   : > { %1401 = vst [vmem:[%s1740_s7 + $0x40] sm:$0xff] %v1277_v56   ;;  %v633_v61 = vadd.f32 %v1729_v42, %v632_v59  ;;  %v673_v62 = vadd.f32 %v1729_v42, %v672_v60  ;;  %v555_v63 = vpop.f32.mrf.mxu0  ;;  %v595_v0 = vpop.f32.mrf.mxu1 }
  0xc2   : > { %v556_v7 = vadd.f32 %v1729_v42, %v555_v63  ;;  %v596_v8 = vadd.f32 %v1729_v42, %v595_v0 }
  0xc3   : > { %v743_v3 = vmax.f32 %v633_v61, 0.0  ;;  %v759_v4 = vmax.f32 %v673_v62, 0.0 }
  0xc4   : > { %v712_v15 = vmax.f32 %v556_v7, 0.0  ;;  %v728_v16 = vmax.f32 %v596_v8, 0.0 }
  0xc5   : > { %v1317_v5 = vpack.c.bf16 %v743_v3, %v742_v1  ;;  %v1357_v6 = vpack.c.bf16 %v759_v4, %v758_v2 }
  0xc7   : > { %1409 = vst [vmem:[%s1740_s7 + $0x80] sm:$0xff] %v1317_v5  }
  0xc8   : > { %1417 = vst [vmem:[%s1740_s7 + $0xc0] sm:$0xff] %v1357_v6   ;;  %v635_v9 = vpop.f32.mrf.mxu2  ;;  %v675_v10 = vpop.f32.mrf.mxu3 }
  0xc9   : > { %v557_v11 = vpop.f32.mrf.mxu0  ;;  %v597_v12 = vpop.f32.mrf.mxu1  ;;  %v636_v21 = vadd.f32 %v1729_v42, %v635_v9  ;;  %v676_v22 = vadd.f32 %v1729_v42, %v675_v10 }
  0xca   : > { %v558_v13 = vadd.f32 %v1729_v42, %v557_v11  ;;  %v598_v14 = vadd.f32 %v1729_v42, %v597_v12 }
  0xcb   : > { %v744_v29 = vmax.f32 %v636_v21, 0.0  ;;  %v760_v30 = vmax.f32 %v676_v22, 0.0 }
  0xcc   : > { %v713_v17 = vmax.f32 %v558_v13, 0.0  ;;  %v729_v18 = vmax.f32 %v598_v14, 0.0 }
  0xce   : > { %v1242_v19 = vpack.c.bf16 %v713_v17, %v712_v15  ;;  %v1282_v20 = vpack.c.bf16 %v729_v18, %v728_v16 }
  0xd0   : > { %1394 = vst [vmem:[%s1740_s7 + $0x8] sm:$0xff] %v1242_v19   ;;  %v637_v23 = vpop.f32.mrf.mxu2  ;;  %v677_v24 = vpop.f32.mrf.mxu3 }
  0xd1   : > { %1402 = vst [vmem:[%s1740_s7 + $0x48] sm:$0xff] %v1282_v20   ;;  %v638_v25 = vadd.f32 %v1729_v42, %v637_v23  ;;  %v678_v26 = vadd.f32 %v1729_v42, %v677_v24  ;;  %v560_v27 = vpop.f32.mrf.mxu0  ;;  %v600_v28 = vpop.f32.mrf.mxu1 }
  0xd2   : > { %v561_v35 = vadd.f32 %v1729_v42, %v560_v27  ;;  %v601_v36 = vadd.f32 %v1729_v42, %v600_v28 }
  0xd3   : > { %v745_v31 = vmax.f32 %v638_v25, 0.0  ;;  %v761_v32 = vmax.f32 %v678_v26, 0.0 }
  0xd4   : > { %v714_v44 = vmax.f32 %v561_v35, 0.0  ;;  %v730_v45 = vmax.f32 %v601_v36, 0.0 }
  0xd5   : > { %v1322_v33 = vpack.c.bf16 %v745_v31, %v744_v29  ;;  %v1362_v34 = vpack.c.bf16 %v761_v32, %v760_v30 }
  0xd7   : > { %1410 = vst [vmem:[%s1740_s7 + $0x88] sm:$0xff] %v1322_v33  }
  0xd8   : > { %1418 = vst [vmem:[%s1740_s7 + $0xc8] sm:$0xff] %v1362_v34   ;;  %v640_v37 = vpop.f32.mrf.mxu2  ;;  %v680_v38 = vpop.f32.mrf.mxu3 }
  0xd9   : > { %v562_v39 = vpop.f32.mrf.mxu0  ;;  %v602_v40 = vpop.f32.mrf.mxu1  ;;  %v641_v50 = vadd.f32 %v1729_v42, %v640_v37  ;;  %v681_v51 = vadd.f32 %v1729_v42, %v680_v38 }
  0xda   : > { %v563_v41 = vadd.f32 %v1729_v42, %v562_v39  ;;  %v603_v43 = vadd.f32 %v1729_v42, %v602_v40 }
  0xdb   : > { %v746_v58 = vmax.f32 %v641_v50, 0.0  ;;  %v762_v59 = vmax.f32 %v681_v51, 0.0 }
  0xdc   : > { %v715_v46 = vmax.f32 %v563_v41, 0.0  ;;  %v731_v47 = vmax.f32 %v603_v43, 0.0 }
  0xde   : > { %v1247_v48 = vpack.c.bf16 %v715_v46, %v714_v44  ;;  %v1287_v49 = vpack.c.bf16 %v731_v47, %v730_v45 }
  0xe0   : > { %1395 = vst [vmem:[%s1740_s7 + $0x10] sm:$0xff] %v1247_v48   ;;  %v642_v52 = vpop.f32.mrf.mxu2  ;;  %v682_v53 = vpop.f32.mrf.mxu3 }
  0xe1   : > { %1403 = vst [vmem:[%s1740_s7 + $0x50] sm:$0xff] %v1287_v49   ;;  %v643_v54 = vadd.f32 %v1729_v42, %v642_v52  ;;  %v683_v55 = vadd.f32 %v1729_v42, %v682_v53  ;;  %v565_v56 = vpop.f32.mrf.mxu0  ;;  %v605_v57 = vpop.f32.mrf.mxu1 }
  0xe2   : > { %v566_v0 = vadd.f32 %v1729_v42, %v565_v56  ;;  %v606_v1 = vadd.f32 %v1729_v42, %v605_v57 }
  0xe3   : > { %v747_v60 = vmax.f32 %v643_v54, 0.0  ;;  %v763_v61 = vmax.f32 %v683_v55, 0.0 }
  0xe4   : > { %v716_v8 = vmax.f32 %v566_v0, 0.0  ;;  %v732_v9 = vmax.f32 %v606_v1, 0.0 }
  0xe5   : > { %v1327_v62 = vpack.c.bf16 %v747_v60, %v746_v58  ;;  %v1367_v63 = vpack.c.bf16 %v763_v61, %v762_v59 }
  0xe7   : > { %1411 = vst [vmem:[%s1740_s7 + $0x90] sm:$0xff] %v1327_v62  }
  0xe8   : > { %1419 = vst [vmem:[%s1740_s7 + $0xd0] sm:$0xff] %v1367_v63   ;;  %v645_v2 = vpop.f32.mrf.mxu2  ;;  %v685_v3 = vpop.f32.mrf.mxu3 }
  0xe9   : > { %v567_v4 = vpop.f32.mrf.mxu0  ;;  %v607_v5 = vpop.f32.mrf.mxu1  ;;  %v646_v14 = vadd.f32 %v1729_v42, %v645_v2  ;;  %v686_v15 = vadd.f32 %v1729_v42, %v685_v3 }
  0xea   : > { %v568_v6 = vadd.f32 %v1729_v42, %v567_v4  ;;  %v608_v7 = vadd.f32 %v1729_v42, %v607_v5 }
  0xeb   : > { %v748_v22 = vmax.f32 %v646_v14, 0.0  ;;  %v764_v23 = vmax.f32 %v686_v15, 0.0 }
  0xec   : > { %v717_v10 = vmax.f32 %v568_v6, 0.0  ;;  %v733_v11 = vmax.f32 %v608_v7, 0.0 }
  0xee   : > { %v1252_v12 = vpack.c.bf16 %v717_v10, %v716_v8  ;;  %v1292_v13 = vpack.c.bf16 %v733_v11, %v732_v9 }
  0xf0   : > { %1396 = vst [vmem:[%s1740_s7 + $0x18] sm:$0xff] %v1252_v12   ;;  %v647_v16 = vpop.f32.mrf.mxu2  ;;  %v687_v17 = vpop.f32.mrf.mxu3 }
  0xf1   : > { %1404 = vst [vmem:[%s1740_s7 + $0x58] sm:$0xff] %v1292_v13   ;;  %v648_v18 = vadd.f32 %v1729_v42, %v647_v16  ;;  %v688_v19 = vadd.f32 %v1729_v42, %v687_v17  ;;  %v570_v20 = vpop.f32.mrf.mxu0  ;;  %v610_v21 = vpop.f32.mrf.mxu1 }
  0xf2   : > { %v571_v28 = vadd.f32 %v1729_v42, %v570_v20  ;;  %v611_v29 = vadd.f32 %v1729_v42, %v610_v21 }
  0xf3   : > { %v749_v24 = vmax.f32 %v648_v18, 0.0  ;;  %v765_v25 = vmax.f32 %v688_v19, 0.0 }
  0xf4   : > { %v718_v36 = vmax.f32 %v571_v28, 0.0  ;;  %v734_v37 = vmax.f32 %v611_v29, 0.0 }
  0xf5   : > { %v1332_v26 = vpack.c.bf16 %v749_v24, %v748_v22  ;;  %v1372_v27 = vpack.c.bf16 %v765_v25, %v764_v23 }
  0xf7   : > { %1412 = vst [vmem:[%s1740_s7 + $0x98] sm:$0xff] %v1332_v26  }
  0xf8   : > { %1420 = vst [vmem:[%s1740_s7 + $0xd8] sm:$0xff] %v1372_v27   ;;  %v650_v30 = vpop.f32.mrf.mxu2  ;;  %v690_v31 = vpop.f32.mrf.mxu3 }
  0xf9   : > { %v572_v32 = vpop.f32.mrf.mxu0  ;;  %v612_v33 = vpop.f32.mrf.mxu1  ;;  %v651_v43 = vadd.f32 %v1729_v42, %v650_v30  ;;  %v691_v44 = vadd.f32 %v1729_v42, %v690_v31 }
  0xfa   : > { %v573_v34 = vadd.f32 %v1729_v42, %v572_v32  ;;  %v613_v35 = vadd.f32 %v1729_v42, %v612_v33 }
  0xfb   : > { %v750_v51 = vmax.f32 %v651_v43, 0.0  ;;  %v766_v52 = vmax.f32 %v691_v44, 0.0 }
  0xfc   : > { %v719_v38 = vmax.f32 %v573_v34, 0.0  ;;  %v735_v39 = vmax.f32 %v613_v35, 0.0 }
  0xfe   : > { %v1257_v40 = vpack.c.bf16 %v719_v38, %v718_v36  ;;  %v1297_v41 = vpack.c.bf16 %v735_v39, %v734_v37 }
 0x100   : > { %1397 = vst [vmem:[%s1740_s7 + $0x20] sm:$0xff] %v1257_v40   ;;  %v652_v45 = vpop.f32.mrf.mxu2  ;;  %v692_v46 = vpop.f32.mrf.mxu3 }
 0x101   : > { %1405 = vst [vmem:[%s1740_s7 + $0x60] sm:$0xff] %v1297_v41   ;;  %v653_v47 = vadd.f32 %v1729_v42, %v652_v45  ;;  %v693_v48 = vadd.f32 %v1729_v42, %v692_v46  ;;  %v575_v49 = vpop.f32.mrf.mxu0  ;;  %v615_v50 = vpop.f32.mrf.mxu1 }
 0x102   : > { %v576_v57 = vadd.f32 %v1729_v42, %v575_v49  ;;  %v616_v58 = vadd.f32 %v1729_v42, %v615_v50 }
 0x103   : > { %v751_v53 = vmax.f32 %v653_v47, 0.0  ;;  %v767_v54 = vmax.f32 %v693_v48, 0.0 }
 0x104   : > { %v720_v1 = vmax.f32 %v576_v57, 0.0  ;;  %v736_v2 = vmax.f32 %v616_v58, 0.0 }
 0x105   : > { %v1337_v55 = vpack.c.bf16 %v751_v53, %v750_v51  ;;  %v1377_v56 = vpack.c.bf16 %v767_v54, %v766_v52 }
 0x107   : > { %1413 = vst [vmem:[%s1740_s7 + $0xa0] sm:$0xff] %v1337_v55  }
 0x108   : > { %1421 = vst [vmem:[%s1740_s7 + $0xe0] sm:$0xff] %v1377_v56   ;;  %v655_v59 = vpop.f32.mrf.mxu2  ;;  %v695_v60 = vpop.f32.mrf.mxu3 }
 0x109   : > { %v577_v61 = vpop.f32.mrf.mxu0  ;;  %v617_v62 = vpop.f32.mrf.mxu1  ;;  %v656_v7 = vadd.f32 %v1729_v42, %v655_v59  ;;  %v696_v8 = vadd.f32 %v1729_v42, %v695_v60 }
 0x10a   : > { %v578_v63 = vadd.f32 %v1729_v42, %v577_v61  ;;  %v618_v0 = vadd.f32 %v1729_v42, %v617_v62 }
 0x10b   : > { %v752_v15 = vmax.f32 %v656_v7, 0.0  ;;  %v768_v16 = vmax.f32 %v696_v8, 0.0 }
 0x10c   : > { %v721_v3 = vmax.f32 %v578_v63, 0.0  ;;  %v737_v4 = vmax.f32 %v618_v0, 0.0 }
 0x10e   : > { %v1262_v5 = vpack.c.bf16 %v721_v3, %v720_v1  ;;  %v1302_v6 = vpack.c.bf16 %v737_v4, %v736_v2 }
 0x110   : > { %1398 = vst [vmem:[%s1740_s7 + $0x28] sm:$0xff] %v1262_v5   ;;  %v657_v9 = vpop.f32.mrf.mxu2  ;;  %v697_v10 = vpop.f32.mrf.mxu3 }
 0x111   : > { %1406 = vst [vmem:[%s1740_s7 + $0x68] sm:$0xff] %v1302_v6   ;;  %v658_v11 = vadd.f32 %v1729_v42, %v657_v9  ;;  %v698_v12 = vadd.f32 %v1729_v42, %v697_v10  ;;  %v580_v13 = vpop.f32.mrf.mxu0  ;;  %v620_v14 = vpop.f32.mrf.mxu1 }
 0x112   : > { %v581_v21 = vadd.f32 %v1729_v42, %v580_v13  ;;  %v621_v22 = vadd.f32 %v1729_v42, %v620_v14 }
 0x113   : > { %v753_v17 = vmax.f32 %v658_v11, 0.0  ;;  %v769_v18 = vmax.f32 %v698_v12, 0.0 }
 0x114   : > { %v722_v29 = vmax.f32 %v581_v21, 0.0  ;;  %v738_v30 = vmax.f32 %v621_v22, 0.0 }
 0x115   : > { %v1342_v19 = vpack.c.bf16 %v753_v17, %v752_v15  ;;  %v1382_v20 = vpack.c.bf16 %v769_v18, %v768_v16 }
 0x117   : > { %1414 = vst [vmem:[%s1740_s7 + $0xa8] sm:$0xff] %v1342_v19  }
 0x118   : > { %1422 = vst [vmem:[%s1740_s7 + $0xe8] sm:$0xff] %v1382_v20   ;;  %v660_v23 = vpop.f32.mrf.mxu2  ;;  %v700_v24 = vpop.f32.mrf.mxu3 }
 0x119   : > { %v582_v25 = vpop.f32.mrf.mxu0  ;;  %v622_v26 = vpop.f32.mrf.mxu1  ;;  %v661_v35 = vadd.f32 %v1729_v42, %v660_v23  ;;  %v701_v36 = vadd.f32 %v1729_v42, %v700_v24 }
 0x11a   : > { %v583_v27 = vadd.f32 %v1729_v42, %v582_v25  ;;  %v623_v28 = vadd.f32 %v1729_v42, %v622_v26 }
 0x11b   : > { %v754_v44 = vmax.f32 %v661_v35, 0.0  ;;  %v770_v45 = vmax.f32 %v701_v36, 0.0 }
 0x11c   : > { %v723_v31 = vmax.f32 %v583_v27, 0.0  ;;  %v739_v32 = vmax.f32 %v623_v28, 0.0 }
 0x11e   : > { %v1267_v33 = vpack.c.bf16 %v723_v31, %v722_v29  ;;  %v1307_v34 = vpack.c.bf16 %v739_v32, %v738_v30 }
 0x120   : > { %1399 = vst [vmem:[%s1740_s7 + $0x30] sm:$0xff] %v1267_v33   ;;  %v662_v37 = vpop.f32.mrf.mxu2  ;;  %v702_v38 = vpop.f32.mrf.mxu3 }
 0x121   : > { %1407 = vst [vmem:[%s1740_s7 + $0x70] sm:$0xff] %v1307_v34   ;;  %v663_v39 = vadd.f32 %v1729_v42, %v662_v37  ;;  %v703_v40 = vadd.f32 %v1729_v42, %v702_v38  ;;  %v585_v41 = vpop.f32.mrf.mxu0  ;;  %v625_v43 = vpop.f32.mrf.mxu1 }
 0x122   : > { %v586_v50 = vadd.f32 %v1729_v42, %v585_v41  ;;  %v626_v51 = vadd.f32 %v1729_v42, %v625_v43 }
 0x123   : > { %v755_v46 = vmax.f32 %v663_v39, 0.0  ;;  %v771_v47 = vmax.f32 %v703_v40, 0.0 }
 0x124   : > { %v724_v58 = vmax.f32 %v586_v50, 0.0  ;;  %v740_v59 = vmax.f32 %v626_v51, 0.0 }
 0x125   : > { %v1347_v48 = vpack.c.bf16 %v755_v46, %v754_v44  ;;  %v1387_v49 = vpack.c.bf16 %v771_v47, %v770_v45 }
 0x127   : > { %1415 = vst [vmem:[%s1740_s7 + $0xb0] sm:$0xff] %v1347_v48  }
 0x128   : > { %1423 = vst [vmem:[%s1740_s7 + $0xf0] sm:$0xff] %v1387_v49   ;;  %v665_v52 = vpop.f32.mrf.mxu2  ;;  %v705_v53 = vpop.f32.mrf.mxu3 }
 0x129   : > { %v587_v54 = vpop.f32.mrf.mxu0  ;;  %v627_v55 = vpop.f32.mrf.mxu1  ;;  %v666_v0 = vadd.f32 %v1729_v42, %v665_v52  ;;  %v706_v1 = vadd.f32 %v1729_v42, %v705_v53 }
 0x12a   : > { %v588_v56 = vadd.f32 %v1729_v42, %v587_v54  ;;  %v628_v57 = vadd.f32 %v1729_v42, %v627_v55 }
 0x12b   : > { %v756_v6 = vmax.f32 %v666_v0, 0.0  ;;  %v772_v7 = vmax.f32 %v706_v1, 0.0 }
 0x12c   : > { %v725_v60 = vmax.f32 %v588_v56, 0.0  ;;  %v741_v61 = vmax.f32 %v628_v57, 0.0 }
 0x12e   : > { %v1272_v62 = vpack.c.bf16 %v725_v60, %v724_v58  ;;  %v1312_v63 = vpack.c.bf16 %v741_v61, %v740_v59 }
 0x130   : > { %1400 = vst [vmem:[%s1740_s7 + $0x38] sm:$0xff] %v1272_v62   ;;  %v667_v2 = vpop.f32.mrf.mxu2  ;;  %v707_v3 = vpop.f32.mrf.mxu3 }
 0x131   : > { %1408 = vst [vmem:[%s1740_s7 + $0x78] sm:$0xff] %v1312_v63   ;;  %v668_v4 = vadd.f32 %v1729_v42, %v667_v2  ;;  %v708_v5 = vadd.f32 %v1729_v42, %v707_v3 }
 0x133   : > { %v757_v8 = vmax.f32 %v668_v4, 0.0  ;;  %v773_v9 = vmax.f32 %v708_v5, 0.0 }
 0x135   : > { %v1352_v10 = vpack.c.bf16 %v757_v8, %v756_v6  ;;  %v1392_v11 = vpack.c.bf16 %v773_v9, %v772_v7 }
 0x137   : > { %1416 = vst [vmem:[%s1740_s7 + $0xb8] sm:$0xff] %v1352_v10  }
 0x138   : > { %1424 = vst [vmem:[%s1740_s7 + $0xf8] sm:$0xff] %v1392_v11  }
 0x139   : > { %1534 = shalt.err (!%p1531_p5)
}
 0x13a   : > { %s1587_s4 = smov 64   ;;  %s1588_s5 = smov 4  }
 0x13b   : > { %1449 = dma.vmem_to_hbm [thread:$0]  (%p1649_p4), %s917_s15, 4096, %s919_s18, %s903_s19, %s1587_s4, %s1587_s4, %s1588_s5  }
 0x13c PF: > { %p1455_p6 = scmp.ge.s32.totalorder %s1585_s17, 2  ;;  %s933_s6 = sand.u32 1, %s1565_s12  }
 0x13d   : > { %s934_s7 = scalar_lea.sflag [#allocation3], %s933_s6 }
 0x13e   : > { %p1452_p7 = pnand %p1455_p6, %p1656_p8 }
 0x140   : > { %p1453_p9 = pneg %p1452_p7 }
 0x142   : > { %1560 = dma.done.wait (%p1453_p9), %s934_s7, 4096  }
 0x143   : > { %1562 = vsyncadd (%p1453_p9), %s934_s7, 4294963200  ;;  %s16_s17 = sadd.s32 1, %s1585_s17   ;;  %s1877_s12 = smov %s1569_s13 }
 0x144   : > { %p13_p10 = scmp.ge.s32.totalorder %s16_s17, 18   ;;  %s1878_s13 = smov %s1573_s14 }
 0x145   : > { %s1879_s14 = smov %s1662_s25  ;;  %s1880_s15 = smov %s1581_s16 }
 0x146   : > { %s1881_s16 = smov %s1883_s20  ;;  %15 = sbr.rel (!%p13_p10) target bundleno = 4 (0x4), region = 73 }
 0x14b   :  { %940 = vsyncpa [#allocation3], 1 }
 0x14c   :  { %942 = vsyncpa [#allocation3 + $0x1], 1 }

</bundles_post_ra>
